<compile_context>
chip_gen: v7x
topology: tpu7x:2x2x1
jax: 0.10.0
libtpu: 0.0.40
codegen_flags: <defaults>
</compile_context>

<pallas_src>
import functools

import jax
import jax.numpy as jnp
from jax.experimental import pallas as pl
from jax.experimental.pallas import tpu as pltpu

NEG_INF = -1.0e9


def _sc_attention_kernel(n_basic, n_heads, use_approx, compute_dtype,
                         x_ref, mask_ref, v1_ref, v2_ref, *rest):
    # rest = [W0, b0, W1, b1, ...] * n_basic, w_sp, b_sp, w_ch, b_ch, out_ref
    weight_refs = rest[:-1]
    out_ref = rest[-1]
    basic_refs = weight_refs[:2 * n_basic]
    w_sp_ref, b_sp_ref, w_ch_ref, b_ch_ref = weight_refs[2 * n_basic:]

    x = x_ref[0]                                  # [G, M, D0] native dtype
    G, M, D0 = x.shape
    H = n_heads
    bb = G // H

    # --- attention_basic: Linear + ReLU stack over all G*M rows on the MXU.
    # Cast to compute dtype only at the matmul boundary; f32 accumulation.
    h = x.reshape(G * M, D0)
    for i in range(n_basic):
        W = basic_refs[2 * i][...]                # [Din, Dout] (compute dtype)
        b = basic_refs[2 * i + 1][...]            # [1, Dout]   (f32)
        h = jnp.dot(h.astype(compute_dtype), W,
                    preferred_element_type=jnp.float32) + b
        h = jnp.maximum(h, 0.0)                   # f32
    Dm = h.shape[-1]
    h_g = h.reshape(G, M, Dm)                     # [G, M, Dm] f32

    # --- mask: broadcast (bb, M) across heads once (no H-replication in HBM).
    mask_b = mask_ref[0]                          # [bb, M] f32 (1 keep / 0 mask)
    mask_g = jnp.broadcast_to(mask_b[:, None, :], (bb, H, M)).reshape(G, M)

    # --- masked mean pool over M: VPU multiply + sublane (XLU) reduction.
    pool_num = jnp.sum(h_g * mask_g[:, :, None], axis=1)          # [G, Dm]
    # Clamp only protects fully-masked rows (NaN in the torch module anyway);
    # mask entries are 0/1 so any valid row has denom >= 1 (exact no-op).
    denom = jnp.maximum(jnp.sum(mask_g, axis=-1, keepdims=True), 1.0)
    pool = pool_num * pl.reciprocal(denom, approx=use_approx)     # [G, Dm]

    # --- spatial logits: Dm -> 1 projection on the VPU + lane reduction.
    w_sp = w_sp_ref[...].reshape(1, 1, Dm)        # f32 row
    alpha_sp = jnp.sum(h_g * w_sp, axis=-1) + b_sp_ref[...]       # [G, M]

    # --- masked softmax over M (f32 tail).
    alpha_sp = jnp.where(mask_g == 0.0, NEG_INF, alpha_sp)
    alpha_sp = alpha_sp - jnp.max(alpha_sp, axis=-1, keepdims=True)
    e = jnp.exp(alpha_sp)
    p = e * pl.reciprocal(jnp.sum(e, axis=-1, keepdims=True),
                          approx=use_approx)                      # [G, M]

    # --- channel gate: sigmoid(Linear(Dm -> Dv)) of pooled features (MXU).
    alpha_ch = jax.nn.sigmoid(
        jnp.dot(pool.astype(compute_dtype), w_ch_ref[...],
                preferred_element_type=jnp.float32) + b_ch_ref[...])  # [G, Dv]

    # --- attention-weighted sum over value2: VPU multiply + sublane reduce.
    v2 = v2_ref[0]                                # [G, M, Dv] native dtype
    ctx = jnp.sum(v2 * p[:, :, None], axis=1)     # [G, Dv] f32

    # --- final gated product.
    out_ref[0] = (v1_ref[0] * ctx * alpha_ch).astype(out_ref.dtype)


def _round_up(x, m):
    return ((x + m - 1) // m) * m


def _tpu_vmem_and_cores():
    """VMEM capacity and TensorCore count; conservative fallback if the query
    is unavailable (64 MiB / 2 TCs, i.e. v7x-like)."""
    vmem = 64 * 1024 * 1024
    n_tc = 2
    try:
        info = pltpu.get_tpu_info()
        vmem = int(getattr(info, "vmem_capacity_bytes", vmem))
        n_tc = 0
        for attr in ("num_cores", "core_count", "num_tensorcores",
                     "tensorcore_count"):
            if hasattr(info, attr):
                try:
                    n_tc = int(getattr(info, attr))
                    break
                except Exception:
                    n_tc = 0
        if n_tc <= 0:
            # Heuristic: 64 MiB per-TC VMEM => megacore part (v7x);
            # 128 MiB => single-TC part (v5e/v6e).
            n_tc = 2 if vmem <= 96 * 1024 * 1024 else 1
    except Exception:
        pass
    return vmem, n_tc


def _block_vmem_bytes(bb, H, M, D0, Dv, Dm, layer_dims,
                      att_itemsize, v2_itemsize, cdt_itemsize):
    """(sublane, lane)-padding-aware estimate of one grid step's VMEM use."""
    G = bb * H
    f32 = 4
    lane = 128
    # Double-buffered streamed blocks (native dtype).
    att_blk = G * _round_up(M, 8) * _round_up(D0, lane) * att_itemsize
    v2_blk = G * _round_up(M, 8) * _round_up(Dv, lane) * v2_itemsize
    mask_blk = _round_up(bb, 8) * _round_up(M, lane) * f32
    v1_blk = _round_up(G, 8) * _round_up(Dv, lane) * f32
    out_blk = _round_up(G, 8) * _round_up(Dv, lane) * f32
    stream = 2 * (att_blk + v2_blk + mask_blk + v1_blk + out_blk)
    # In-kernel intermediates: a few live f32 copies of the largest MLP
    # activation plus its compute-dtype cast (covers Mosaic temporaries too).
    max_dim = max([D0, Dm, Dv] + list(layer_dims))
    act_rows = _round_up(G * M, 8)
    interm = act_rows * _round_up(max_dim, lane) * (3 * f32 + 2 * cdt_itemsize)
    # Small per-row tensors (mask_g, alpha_sp, p, pool, ctx, gates).
    small = _round_up(G, 8) * (3 * _round_up(M, lane)
                               + 2 * _round_up(Dm, lane)
                               + 3 * _round_up(Dv, lane)) * f32
    # Resident weights (tiny; padded, x2 for buffering slack).
    wbytes = 0
    prev = D0
    for d in layer_dims:
        wbytes += _round_up(prev, 8) * _round_up(d, lane) * cdt_itemsize
        wbytes += 8 * _round_up(d, lane) * f32
        prev = d
    wbytes += 8 * _round_up(Dm, lane) * f32                    # w_sp / b_sp
    wbytes += _round_up(Dm, 8) * _round_up(Dv, lane) * cdt_itemsize
    wbytes += 8 * _round_up(Dv, lane) * f32
    return stream + interm + small + 2 * wbytes


def _pick_block_b(B, H, M, D0, Dv, Dm, layer_dims,
                  att_itemsize, v2_itemsize, cdt_itemsize,
                  vmem_budget_bytes, min_grid_steps):
    """Largest divisor of B that fits the padded VMEM budget and keeps at
    least `min_grid_steps` grid steps (>=2..4 on multi-TC parts so the
    'parallel' batch axis shards across TensorCores; 1 on single-TC parts)."""
    cap = B
    if min_grid_steps > 1 and B >= min_grid_steps:
        cap = max(1, B // min_grid_steps)
    block_b = 1
    for d in range(1, cap + 1):
        if B % d != 0:
            continue
        if _block_vmem_bytes(d, H, M, D0, Dv, Dm, layer_dims,
                             att_itemsize, v2_itemsize,
                             cdt_itemsize) <= vmem_budget_bytes:
            block_b = d
    return block_b


def sc_attention(att_map, att_mask, value1, value2, params,
                 compute_dtype=jnp.bfloat16, block_b=None):
    """params = (basic_params, (w_last, b_last), (w_last2, b_last2)),
    basic_params is a list of (W, b) pairs with W:[Din, Dout], b:[Dout]."""
    B, H, M, D0 = att_map.shape
    Dv = value1.shape[-1]
    basic_params, (w_last, b_last), (w_last2, b_last2) = params
    n_basic = len(basic_params)
    Dm = w_last.shape[0]
    cdt = compute_dtype
    use_approx = (jnp.dtype(cdt) != jnp.dtype(jnp.float32))
    f32 = jnp.float32
    layer_dims = [W.shape[1] for (W, _) in basic_params]

    vmem_bytes, n_tc = _tpu_vmem_and_cores()
    vmem_budget = int(vmem_bytes * 0.70)
    vmem_limit = int(vmem_bytes * 0.85)

    if block_b is None:
        if n_tc <= 1:
            min_steps = 1                      # grid is a sequential loop
        else:
            min_steps = 4 if B >= 4 else min(B, 2)
        block_b = _pick_block_b(B, H, M, D0, Dv, Dm, layer_dims,
                                att_map.dtype.itemsize,
                                value2.dtype.itemsize,
                                jnp.dtype(cdt).itemsize,
                                vmem_budget, min_steps)
    assert B % block_b == 0
    nb = B // block_b
    G = block_b * H

    # Batch-blocked operand layouts.  No dtype casts on the big streamed
    # tensors here: att_map / value2 stay in their native dtype in HBM and are
    # cast (only where needed) inside the kernel.  All reshapes below only
    # split/collapse leading dims (metadata-only in XLA).
    att4 = att_map.reshape(nb, G, M, D0)
    v2r = value2.reshape(nb, G, M, Dv)
    v1r = value1.astype(f32).reshape(nb, G, Dv)
    mask3 = att_mask.astype(f32).reshape(nb, block_b, M)   # no H-replication

    weight_args = []
    in_specs = [
        pl.BlockSpec((1, G, M, D0), lambda b: (b, 0, 0, 0)),   # att_map block
        pl.BlockSpec((1, block_b, M), lambda b: (b, 0, 0)),    # mask block
        pl.BlockSpec((1, G, Dv), lambda b: (b, 0, 0)),         # value1 block
        pl.BlockSpec((1, G, M, Dv), lambda b: (b, 0, 0, 0)),   # value2 block
    ]
    # Weights: constant (0, 0) index maps -> blocks stay resident, no re-DMA.
    for (W, bias) in basic_params:
        weight_args += [W.astype(cdt), bias.reshape(1, -1).astype(f32)]
        in_specs += [pl.BlockSpec(W.shape, lambda b: (0, 0)),
                     pl.BlockSpec((1, bias.shape[0]), lambda b: (0, 0))]
    weight_args += [w_last.reshape(1, Dm).astype(f32),   # row layout (VPU path)
                    b_last.reshape(1, 1).astype(f32),
                    w_last2.astype(cdt),
                    b_last2.reshape(1, -1).astype(f32)]
    in_specs += [pl.BlockSpec((1, Dm), lambda b: (0, 0)),
                 pl.BlockSpec((1, 1), lambda b: (0, 0)),
                 pl.BlockSpec(w_last2.shape, lambda b: (0, 0)),
                 pl.BlockSpec((1, b_last2.shape[0]), lambda b: (0, 0))]

    # Advisory cost estimate for XLA's scheduler.
    mlp_flops = 2 * B * H * M * sum(W.shape[0] * W.shape[1]
                                    for (W, _) in basic_params)
    misc_flops = 2 * B * H * M * (2 * Dm + Dv) + 2 * B * H * Dm * Dv
    bytes_io = int(att_map.size * att_map.dtype.itemsize
                   + value2.size * value2.dtype.itemsize
                   + value1.size * value1.dtype.itemsize
                   + att_mask.size * att_mask.dtype.itemsize
                   + B * H * Dv * 4)
    cost = pl.CostEstimate(flops=int(mlp_flops + misc_flops),
                           transcendentals=int(B * H * (M + Dv)),
                           bytes_accessed=bytes_io)

    kernel = functools.partial(_sc_attention_kernel, n_basic, H,
                               use_approx, cdt)
    out = pl.pallas_call(
        kernel,
        out_shape=jax.ShapeDtypeStruct((nb, G, Dv), jnp.float32),
        grid=(nb,),
        in_specs=in_specs,
        out_specs=pl.BlockSpec((1, G, Dv), lambda b: (b, 0, 0)),
        compiler_params=pltpu.CompilerParams(
            dimension_semantics=("parallel",),
            vmem_limit_bytes=vmem_limit),
        cost_estimate=cost,
    )(att4, mask3, v1r, v2r, *weight_args)
    return out.reshape(B, H, Dv)


def sc_attention_ref(att_map, att_mask, value1, value2, params):
    """Pure-JAX reference replicating the PyTorch module (eval mode)."""
    basic_params, (w_last, b_last), (w_last2, b_last2) = params
    h = att_map
    for (W, b) in basic_params:
        h = jnp.maximum(h @ W + b, 0.0)
    mask = att_mask[:, None, :]                       # [B, 1, M]
    mask_ext = mask[..., None]                        # [B, 1, M, 1]
    pool = jnp.sum(h * mask_ext, axis=-2) / jnp.sum(mask_ext, axis=-2)
    alpha_sp = (h @ w_last + b_last)[..., 0]          # [B, H, M]
    alpha_ch = jax.nn.sigmoid(pool @ w_last2 + b_last2)
    alpha_sp = jnp.where(mask == 0.0, NEG_INF, alpha_sp)
    alpha_sp = jax.nn.softmax(alpha_sp, axis=-1)
    ctx = jnp.einsum('bhm,bhmd->bhd', alpha_sp, value2)
    return value1 * ctx * alpha_ch


def init_params(key, mid_dims):
    """Deterministic synthetic weights; shapes follow SCAttention.__init__."""
    basic_params = []
    for i in range(1, len(mid_dims) - 1):
        key, k1, k2 = jax.random.split(key, 3)
        W = 0.1 * jax.random.normal(k1, (mid_dims[i - 1], mid_dims[i]), jnp.float32)
        b = 0.05 * jax.random.normal(k2, (mid_dims[i],), jnp.float32)
        basic_params.append((W, b))
    key, k1, k2, k3, k4 = jax.random.split(key, 5)
    w_last = 0.1 * jax.random.normal(k1, (mid_dims[-2], 1), jnp.float32)
    b_last = 0.05 * jax.random.normal(k2, (1,), jnp.float32)
    w_last2 = 0.1 * jax.random.normal(k3, (mid_dims[-2], mid_dims[-1]), jnp.float32)
    b_last2 = 0.05 * jax.random.normal(k4, (mid_dims[-1],), jnp.float32)
    return basic_params, (w_last, b_last), (w_last2, b_last2)


if __name__ == "__main__":
    mid_dims = [32, 16, 8]      # basic: Linear(32,16)+ReLU; last: 16->1; last2: 16->8
    B, H, M = 2, 4, 8
    D0, Dv = mid_dims[0], mid_dims[-1]

    root = jax.random.PRNGKey(0)
    kp, ka, k1, k2 = jax.random.split(root, 4)

    params = init_params(kp, mid_dims)
    att_map = jax.random.normal(ka, (B, H, M, D0), jnp.float32)
    value1 = jax.random.normal(k1, (B, H, Dv), jnp.float32)
    value2 = jax.random.normal(k2, (B, H, M, Dv), jnp.float32)
    att_mask = jnp.ones((B, M), jnp.float32)
    att_mask = att_mask.at[1, 5:].set(0.0)   # exercise the masking path

    ref = sc_attention_ref(att_map, att_mask, value1, value2, params)

    # f32 path: exact-semantics validation (exact reciprocals, f32 matmuls).
    out_f32 = sc_attention(att_map, att_mask, value1, value2, params,
                           compute_dtype=jnp.float32)
    out_f32 = jax.block_until_ready(out_f32)
    assert out_f32.shape == (B, H, Dv)
    assert jnp.allclose(out_f32, ref, rtol=1e-4, atol=1e-4), (
        f"f32 max abs err {jnp.max(jnp.abs(out_f32 - ref))}")

    # bf16 matmul-operand path (performance default): looser tolerance.
    out_bf16 = sc_attention(att_map, att_mask, value1, value2, params,
                            compute_dtype=jnp.bfloat16)
    out_bf16 = jax.block_until_ready(out_bf16)
    assert out_bf16.shape == (B, H, Dv)
    assert jnp.allclose(out_bf16, ref, rtol=5e-2, atol=5e-2), (
        f"bf16 max abs err {jnp.max(jnp.abs(out_bf16 - ref))}")

    print("KERNEL_OK")
</pallas_src>

<mosaic_0001>
module attributes {stable_mosaic.version = 11 : i64} {
  func.func @_sc_attention_kernel(%arg0: i32, %arg1: memref<1x4x8x32xf32, #tpu.memory_space<vmem>>, %arg2: memref<1x1x8xf32, #tpu.memory_space<vmem>>, %arg3: memref<1x4x8xf32, #tpu.memory_space<vmem>>, %arg4: memref<1x4x8x8xf32, #tpu.memory_space<vmem>>, %arg5: memref<32x16xf32, #tpu.memory_space<vmem>>, %arg6: memref<1x16xf32, #tpu.memory_space<vmem>>, %arg7: memref<1x16xf32, #tpu.memory_space<vmem>>, %arg8: memref<1x1xf32, #tpu.memory_space<vmem>>, %arg9: memref<16x8xf32, #tpu.memory_space<vmem>>, %arg10: memref<1x8xf32, #tpu.memory_space<vmem>>, %arg11: memref<1x4x8xf32, #tpu.memory_space<vmem>>) attributes {dimension_semantics = [#tpu.dimension_semantics<parallel>], iteration_bounds = array<i64: 2>, scalar_prefetch = 0 : i64, scratch_operands = 0 : i64, tpu.core_type = #tpu.core_type<tc>, window_params = [{transform_indices = @transform_0, window_bounds = array<i64: 1, 4, 8, 32>}, {transform_indices = @transform_1, window_bounds = array<i64: 1, 1, 8>}, {transform_indices = @transform_2, window_bounds = array<i64: 1, 4, 8>}, {transform_indices = @transform_3, window_bounds = array<i64: 1, 4, 8, 8>}, {pipeline_mode = #tpu.pipeline_mode<synchronous>, transform_indices = @transform_4, window_bounds = array<i64: 32, 16>}, {pipeline_mode = #tpu.pipeline_mode<synchronous>, transform_indices = @transform_5, window_bounds = array<i64: 1, 16>}, {pipeline_mode = #tpu.pipeline_mode<synchronous>, transform_indices = @transform_6, window_bounds = array<i64: 1, 16>}, {pipeline_mode = #tpu.pipeline_mode<synchronous>, transform_indices = @transform_7, window_bounds = array<i64: 1, 1>}, {pipeline_mode = #tpu.pipeline_mode<synchronous>, transform_indices = @transform_8, window_bounds = array<i64: 16, 8>}, {pipeline_mode = #tpu.pipeline_mode<synchronous>, transform_indices = @transform_9, window_bounds = array<i64: 1, 8>}, {transform_indices = @transform_10, window_bounds = array<i64: 1, 4, 8>}]} {
    %c0 = arith.constant 0 : index
    %c0_0 = arith.constant 0 : index
    %c0_1 = arith.constant 0 : index
    %c0_2 = arith.constant 0 : index
    %0 = vector.load %arg1[%c0, %c0_0, %c0_1, %c0_2] : memref<1x4x8x32xf32, #tpu.memory_space<vmem>>, vector<1x4x8x32xf32>
    %1 = vector.shape_cast %0 : vector<1x4x8x32xf32> to vector<4x8x32xf32>
    %2 = vector.shape_cast %1 : vector<4x8x32xf32> to vector<32x32xf32>
    %c0_3 = arith.constant 0 : index
    %c0_4 = arith.constant 0 : index
    %3 = vector.load %arg5[%c0_3, %c0_4] : memref<32x16xf32, #tpu.memory_space<vmem>>, vector<32x16xf32>
    %c0_5 = arith.constant 0 : index
    %c0_6 = arith.constant 0 : index
    %4 = vector.load %arg6[%c0_5, %c0_6] : memref<1x16xf32, #tpu.memory_space<vmem>>, vector<1x16xf32>
    %cst = arith.constant dense<0.000000e+00> : vector<32x16xf32>
    %5 = tpu.matmul %2, %3, %cst {dimension_numbers = #tpu.dot_dimension_numbers<[1], [0], [0], [1], [0, 0, 1, 1], [], []>} : vector<32x32xf32>, vector<32x16xf32>, vector<32x16xf32> -> vector<32x16xf32>
    %6 = vector.broadcast %4 : vector<1x16xf32> to vector<32x16xf32>
    %7 = arith.addf %5, %6 : vector<32x16xf32>
    %cst_7 = arith.constant 0.000000e+00 : f32
    %8 = vector.broadcast %cst_7 : f32 to vector<32x16xf32>
    %9 = arith.maximumf %7, %8 : vector<32x16xf32>
    %10 = vector.shape_cast %9 : vector<32x16xf32> to vector<4x8x16xf32>
    %c0_8 = arith.constant 0 : index
    %c0_9 = arith.constant 0 : index
    %c0_10 = arith.constant 0 : index
    %11 = vector.load %arg2[%c0_8, %c0_9, %c0_10] : memref<1x1x8xf32, #tpu.memory_space<vmem>>, vector<1x1x8xf32>
    %12 = vector.shape_cast %11 : vector<1x1x8xf32> to vector<1x8xf32>
    %13 = vector.shape_cast %12 : vector<1x8xf32> to vector<1x1x8xf32>
    %14 = vector.shape_cast %13 : vector<1x1x8xf32> to vector<1x1x8xf32>
    %15 = vector.broadcast %14 : vector<1x1x8xf32> to vector<1x4x8xf32>
    %16 = vector.shape_cast %15 : vector<1x4x8xf32> to vector<4x8xf32>
    %17 = vector.shape_cast %16 : vector<4x8xf32> to vector<4x8x1xf32>
    %18 = vector.broadcast %17 : vector<4x8x1xf32> to vector<4x8x16xf32>
    %19 = arith.mulf %10, %18 : vector<4x8x16xf32>
    %cst_11 = arith.constant dense<0.000000e+00> : vector<4x16xf32>
    %20 = vector.multi_reduction <add>, %19, %cst_11 [1] : vector<4x8x16xf32> to vector<4x16xf32>
    %cst_12 = arith.constant dense<0.000000e+00> : vector<4xf32>
    %21 = vector.multi_reduction <add>, %16, %cst_12 [1] : vector<4x8xf32> to vector<4xf32>
    %22 = vector.shape_cast %21 : vector<4xf32> to vector<4x1xf32>
    %cst_13 = arith.constant 1.000000e+00 : f32
    %23 = vector.broadcast %cst_13 : f32 to vector<4x1xf32>
    %24 = arith.maximumf %22, %23 : vector<4x1xf32>
    %25 = tpu.reciprocal %24 : vector<4x1xf32> -> vector<4x1xf32>
    %26 = vector.broadcast %25 : vector<4x1xf32> to vector<4x16xf32>
    %27 = arith.mulf %20, %26 : vector<4x16xf32>
    %c0_14 = arith.constant 0 : index
    %c0_15 = arith.constant 0 : index
    %28 = vector.load %arg7[%c0_14, %c0_15] : memref<1x16xf32, #tpu.memory_space<vmem>>, vector<1x16xf32>
    %29 = vector.shape_cast %28 : vector<1x16xf32> to vector<1x1x16xf32>
    %30 = vector.broadcast %29 : vector<1x1x16xf32> to vector<4x8x16xf32>
    %31 = arith.mulf %10, %30 : vector<4x8x16xf32>
    %cst_16 = arith.constant dense<0.000000e+00> : vector<4x8xf32>
    %32 = vector.multi_reduction <add>, %31, %cst_16 [2] : vector<4x8x16xf32> to vector<4x8xf32>
    %c0_17 = arith.constant 0 : index
    %c0_18 = arith.constant 0 : index
    %33 = vector.load %arg8[%c0_17, %c0_18] : memref<1x1xf32, #tpu.memory_space<vmem>>, vector<1x1xf32>
    %34 = vector.broadcast %33 : vector<1x1xf32> to vector<4x8xf32>
    %35 = arith.addf %32, %34 : vector<4x8xf32>
    %cst_19 = arith.constant 0.000000e+00 : f32
    %36 = vector.broadcast %cst_19 : f32 to vector<4x8xf32>
    %37 = arith.cmpf oeq, %16, %36 : vector<4x8xf32>
    %cst_20 = arith.constant -1.000000e+09 : f32
    %38 = vector.broadcast %cst_20 : f32 to vector<4x8xf32>
    %39 = arith.select %37, %38, %35 : vector<4x8xi1>, vector<4x8xf32>
    %cst_21 = arith.constant dense<0xFF800000> : vector<4xf32>
    %40 = vector.multi_reduction <maximumf>, %39, %cst_21 [1] : vector<4x8xf32> to vector<4xf32>
    %41 = vector.shape_cast %40 : vector<4xf32> to vector<4x1xf32>
    %42 = vector.broadcast %41 : vector<4x1xf32> to vector<4x8xf32>
    %43 = arith.subf %39, %42 : vector<4x8xf32>
    %44 = math.exp %43 : vector<4x8xf32>
    %cst_22 = arith.constant dense<0.000000e+00> : vector<4xf32>
    %45 = vector.multi_reduction <add>, %44, %cst_22 [1] : vector<4x8xf32> to vector<4xf32>
    %46 = vector.shape_cast %45 : vector<4xf32> to vector<4x1xf32>
    %47 = tpu.reciprocal %46 : vector<4x1xf32> -> vector<4x1xf32>
    %48 = vector.broadcast %47 : vector<4x1xf32> to vector<4x8xf32>
    %49 = arith.mulf %44, %48 : vector<4x8xf32>
    %c0_23 = arith.constant 0 : index
    %c0_24 = arith.constant 0 : index
    %50 = vector.load %arg9[%c0_23, %c0_24] : memref<16x8xf32, #tpu.memory_space<vmem>>, vector<16x8xf32>
    %cst_25 = arith.constant dense<0.000000e+00> : vector<4x8xf32>
    %51 = tpu.matmul %27, %50, %cst_25 {dimension_numbers = #tpu.dot_dimension_numbers<[1], [0], [0], [1], [0, 0, 1, 1], [], []>} : vector<4x16xf32>, vector<16x8xf32>, vector<4x8xf32> -> vector<4x8xf32>
    %c0_26 = arith.constant 0 : index
    %c0_27 = arith.constant 0 : index
    %52 = vector.load %arg10[%c0_26, %c0_27] : memref<1x8xf32, #tpu.memory_space<vmem>>, vector<1x8xf32>
    %53 = vector.broadcast %52 : vector<1x8xf32> to vector<4x8xf32>
    %54 = arith.addf %51, %53 : vector<4x8xf32>
    %55 = arith.negf %54 : vector<4x8xf32>
    %56 = math.exp %55 : vector<4x8xf32>
    %cst_28 = arith.constant 1.000000e+00 : f32
    %57 = vector.broadcast %cst_28 : f32 to vector<4x8xf32>
    %58 = arith.addf %57, %56 : vector<4x8xf32>
    %59 = arith.divf %57, %58 : vector<4x8xf32>
    %c0_29 = arith.constant 0 : index
    %c0_30 = arith.constant 0 : index
    %c0_31 = arith.constant 0 : index
    %c0_32 = arith.constant 0 : index
    %60 = vector.load %arg4[%c0_29, %c0_30, %c0_31, %c0_32] : memref<1x4x8x8xf32, #tpu.memory_space<vmem>>, vector<1x4x8x8xf32>
    %61 = vector.shape_cast %60 : vector<1x4x8x8xf32> to vector<4x8x8xf32>
    %62 = vector.shape_cast %49 : vector<4x8xf32> to vector<4x8x1xf32>
    %63 = vector.broadcast %62 : vector<4x8x1xf32> to vector<4x8x8xf32>
    %64 = arith.mulf %61, %63 : vector<4x8x8xf32>
    %cst_33 = arith.constant dense<0.000000e+00> : vector<4x8xf32>
    %65 = vector.multi_reduction <add>, %64, %cst_33 [1] : vector<4x8x8xf32> to vector<4x8xf32>
    %c0_34 = arith.constant 0 : index
    %c0_35 = arith.constant 0 : index
    %c0_36 = arith.constant 0 : index
    %66 = vector.load %arg3[%c0_34, %c0_35, %c0_36] : memref<1x4x8xf32, #tpu.memory_space<vmem>>, vector<1x4x8xf32>
    %67 = vector.shape_cast %66 : vector<1x4x8xf32> to vector<4x8xf32>
    %68 = arith.mulf %67, %65 : vector<4x8xf32>
    %69 = arith.mulf %68, %59 : vector<4x8xf32>
    %c0_37 = arith.constant 0 : index
    %c0_38 = arith.constant 0 : index
    %c0_39 = arith.constant 0 : index
    %70 = vector.load %arg11[%c0_37, %c0_38, %c0_39] : memref<1x4x8xf32, #tpu.memory_space<vmem>>, vector<1x4x8xf32>
    %71 = vector.shape_cast %70 : vector<1x4x8xf32> to vector<4x8xf32>
    %72 = vector.shape_cast %69 : vector<4x8xf32> to vector<1x4x8xf32>
    tpu.vector_store %arg11[%c0_37, %c0_38, %c0_39], %72 {strides = array<i32>} : memref<1x4x8xf32, #tpu.memory_space<vmem>>, vector<1x4x8xf32>,
    return
  }
  func.func @transform_0(%arg0: i32) -> (i32, i32, i32, i32) {
    %c0_i32 = arith.constant 0 : i32
    %c0_i32_0 = arith.constant 0 : i32
    %c0_i32_1 = arith.constant 0 : i32
    %c0_i32_2 = arith.constant 0 : i32
    return %arg0, %c0_i32, %c0_i32_0, %c0_i32_1 : i32, i32, i32, i32
  }
  func.func @transform_1(%arg0: i32) -> (i32, i32, i32) {
    %c0_i32 = arith.constant 0 : i32
    %c0_i32_0 = arith.constant 0 : i32
    %c0_i32_1 = arith.constant 0 : i32
    return %arg0, %c0_i32, %c0_i32_0 : i32, i32, i32
  }
  func.func @transform_2(%arg0: i32) -> (i32, i32, i32) {
    %c0_i32 = arith.constant 0 : i32
    %c0_i32_0 = arith.constant 0 : i32
    %c0_i32_1 = arith.constant 0 : i32
    return %arg0, %c0_i32, %c0_i32_0 : i32, i32, i32
  }
  func.func @transform_3(%arg0: i32) -> (i32, i32, i32, i32) {
    %c0_i32 = arith.constant 0 : i32
    %c0_i32_0 = arith.constant 0 : i32
    %c0_i32_1 = arith.constant 0 : i32
    %c0_i32_2 = arith.constant 0 : i32
    return %arg0, %c0_i32, %c0_i32_0, %c0_i32_1 : i32, i32, i32, i32
  }
  func.func @transform_4(%arg0: i32) -> (i32, i32) {
    %c0_i32 = arith.constant 0 : i32
    %c0_i32_0 = arith.constant 0 : i32
    %c0_i32_1 = arith.constant 0 : i32
    return %c0_i32, %c0_i32_0 : i32, i32
  }
  func.func @transform_5(%arg0: i32) -> (i32, i32) {
    %c0_i32 = arith.constant 0 : i32
    %c0_i32_0 = arith.constant 0 : i32
    %c0_i32_1 = arith.constant 0 : i32
    return %c0_i32, %c0_i32_0 : i32, i32
  }
  func.func @transform_6(%arg0: i32) -> (i32, i32) {
    %c0_i32 = arith.constant 0 : i32
    %c0_i32_0 = arith.constant 0 : i32
    %c0_i32_1 = arith.constant 0 : i32
    return %c0_i32, %c0_i32_0 : i32, i32
  }
  func.func @transform_7(%arg0: i32) -> (i32, i32) {
    %c0_i32 = arith.constant 0 : i32
    %c0_i32_0 = arith.constant 0 : i32
    %c0_i32_1 = arith.constant 0 : i32
    return %c0_i32, %c0_i32_0 : i32, i32
  }
  func.func @transform_8(%arg0: i32) -> (i32, i32) {
    %c0_i32 = arith.constant 0 : i32
    %c0_i32_0 = arith.constant 0 : i32
    %c0_i32_1 = arith.constant 0 : i32
    return %c0_i32, %c0_i32_0 : i32, i32
  }
  func.func @transform_9(%arg0: i32) -> (i32, i32) {
    %c0_i32 = arith.constant 0 : i32
    %c0_i32_0 = arith.constant 0 : i32
    %c0_i32_1 = arith.constant 0 : i32
    return %c0_i32, %c0_i32_0 : i32, i32
  }
  func.func @transform_10(%arg0: i32) -> (i32, i32, i32) {
    %c0_i32 = arith.constant 0 : i32
    %c0_i32_0 = arith.constant 0 : i32
    %c0_i32_1 = arith.constant 0 : i32
    return %arg0, %c0_i32, %c0_i32_0 : i32, i32, i32
  }
}

</mosaic_0001>

<bundles_post_ra>
// kernel: tpu_custom_call.1
= control target key start
LH: loop header
LB: loop body
LE: loop exit
PB: predicated region body
PF: predicated region fallthrough
CT: control target
= control target key end

     0   :  { %s1643_s0 = inlined_call_operand.vmem [shape: f32[2,4,8,32], index: 0, kind: input, shape index: {}]   ;;  %s1644_s1 = inlined_call_operand.vmem [shape: f32[2,1,8], index: 1, kind: input, shape index: {}]   ;;  %s1645_s2 = inlined_call_operand.hbm [shape: f32[2,4,8], index: 2, kind: input, shape index: {}]   ;;  %s1646_s3 = inlined_call_operand.hbm [shape: f32[2,4,8,8], index: 3, kind: input, shape index: {}]   ;;  %s1647_s4 = inlined_call_operand.vmem [shape: f32[32,16], index: 4, kind: input, shape index: {}]   ;;  %s1648_s5 = inlined_call_operand.vmem [shape: f32[1,16], index: 5, kind: input, shape index: {}]   ;;  %s1649_s6 = inlined_call_operand.vmem [shape: f32[1,16], index: 6, kind: input, shape index: {}]   ;;  %s1650_s7 = inlined_call_operand.<no memory space> [shape: f32[1,1], index: 7, kind: input, shape index: {}]   ;;  %s1651_s8 = inlined_call_operand.vmem [shape: f32[16,8], index: 8, kind: input, shape index: {}]   ;;  %s1652_s9 = inlined_call_operand.vmem [shape: f32[1,8], index: 9, kind: input, shape index: {}]   ;;  %s1653_s10 = inlined_call_operand.hbm [shape: f32[2,4,8], index: 10, kind: output, shape index: {}]  }
   0x1   :  { %1658 = sst [smem:[#allocation14_spill]] %s1645_s2  ;;  %v15_v0 = vstv %s1650_s7 }
   0x2   :  { %1659 = sst [smem:[#allocation15_spill]] %s1646_s3  ;;  %16 = vst [vmem:[#allocation2] sm:$0x1] %v15_v0 }
   0x3   :  { %17 = vsyncpa [#allocation4], 0 }
   0x4   :  { %19 = vsyncpa [#allocation4 + $0x1], 0 }
   0x5   :  { %20 = vsyncpa [#allocation7], 0 }
   0x6   :  { %22 = vsyncpa [#allocation7 + $0x1], 0 }
   0x7   :  { %23 = vsyncpa [#allocation5], 0 }
   0x8   :  { %25 = vsyncpa [#allocation5 + $0x1], 0  ;;  %s1341_s15 = smov 0   ;;  %s1343_s16 = smov 0  }
   0x9   :  { %s1345_s17 = smov 0   ;;  %s1347_s18 = smov 0  }
   0xa LB: > { %1660 = sst [smem:[#allocation12_spill]] %s1268_s17  ;;  %s1362_s7 = sadd.s32 4294967295, %s1272_s18   ;;  %s1272_s18 = sphi %s1347_s18, %s1681_s18   ;;  %s1268_s17 = sphi %s1345_s17, %s1678_s17   ;;  %s1264_s16 = sphi %s1343_s16, %s1680_s16   ;;  %s1260_s15 = sphi %s1341_s15, %s1679_s15  }
   0xb   : > { %s999_s19 = sadd.s32 4294967294, %s1272_s18   ;;  %s1366_s20 = sadd.s32 1, %s1272_s18  }
   0xc   : > { %s90_s21 = sadd.s32 1, %s1268_s17  ;;  %s87_s22 = ssub.s32 %s1272_s18, %s1366_s20 }
   0xd   : > { %p97_p0 = scmp.ne.s32.totalorder %s1268_s17, %s1264_s16  ;;  %p88_p1 = scmp.eq.s32.totalorder %s87_s22, 0 }
   0xe   : > { %p98_p2 = scmp.eq.s32.totalorder %s1272_s18, 0  ;;  %p103_p3 = scmp.ne.s32.totalorder %s1264_s16, %s1260_s15 }
   0xf   : > { %p104_p4 = scmp.eq.s32.totalorder %s1362_s7, 0  ;;  %p279_p7 = scmp.eq.s32.totalorder %s1362_s7, 1 }
  0x10   : > { %s1378_s23 = scalar_select %p88_p1, %s1268_s17, %s90_s21  }
  0x11   : > { %p1380_p5 = por %p98_p2, %p97_p0  ;;  %p1384_p6 = por %p104_p4, %p103_p3 }
  0x12   : > { %1661 = sst [smem:[#allocation13_spill]] %s1378_s23  ;;  %p285_p8 = scmp.eq.s32.totalorder %s999_s19, 1 }
  0x13   : > { %s1663_s25 = scalar_select %p1384_p6, 1, 0 }
  0x14   : > { %p1090_p10 = scmp.lt.s32.totalorder %s1272_s18, 2  ;;  %p1391_p11 = por %p279_p7, %p97_p0 }
  0x15   : > { %p1395_p12 = por %p285_p8, %p103_p3  ;;  %s1400_s28 = sand.u32 1, %s1268_s17  }
  0x16   : > { %s1664_s26 = scalar_select %p1391_p11, 1, 0 }
  0x17   : > { %s1665_s27 = scalar_select %p1395_p12, 1, 0 }
  0x18   : > { %s1003_s29 = sshll.u32 %s1272_s18, 6  ;;  %s1002_s30 = sshll.u32 %s1400_s28, 2 }
  0x19   : > { %s1666_s2 = sld [smem:[#allocation14_spill]]  ;;  %s341_s14 = scalar_lea.vmem [#allocation3], %s1002_s30 }
  0x1a   : > { %s348_s19 = sshll.u32 %s341_s14, 4  ;;  %p1411_p13 = pnand %p1090_p10, %p1380_p5  ;;  %s1415_s19 = int_to_ptr.vmem [resolvable:$true] %s348_s19 }
  0x1b   : > { %s338_s22 = scalar_lea.sflag [#allocation4], %s1400_s28 }
  0x1c   : > { %p1144_p3 = pneg %p1411_p13 }
  0x1f   : > { %s1407_s13 = scalar_lea.hbm %s1666_s2, %s1003_s29  ;;  %s1147_s11 = scalar_lea.hbm %s1666_s2, 128 }
  0x20   : > { %s1142_s29 = scalar_lea.hbm %s1407_s13, 64  ;;  %p1148_p5 = scmp.lt.u32.totalorder %s1407_s13, %s1666_s2 }
  0x21   : > { %p1143_p2 = scmp.ne.s32.totalorder %s1407_s13, %s1142_s29  ;;  %p1149_p8 = scmp.lt.u32.totalorder %s1147_s11, %s1142_s29 }
  0x22   : > { %p1151_p9 = scmp.lt.u32.totalorder %s1142_s29, %s1407_s13 }
  0x23   : > { %p1145_p4 = pnand %p1144_p3, %p1143_p2  ;;  %p1150_p10 = por %p1149_p8, %p1148_p5 }
  0x25   : > { %p1146_p7 = pneg %p1145_p4  ;;  %p1152_p0 = por %p1151_p9, %p1150_p10 }
  0x27   : > { %p1153_p1 = pnand %p1152_p0, %p1146_p7 }
  0x29   : > { %1156 = shalt.err (!%p1153_p1)
}
  0x2a   : > { %s1157_s23 = scalar_lea.vmem %s1415_s19, 64  ;;  %s1274_s24 = smov [#allocation3]  }
  0x2b   : > { %p1158_p2 = scmp.ne.s32.totalorder %s1415_s19, %s1157_s23  ;;  %s1162_s30 = sshll.u32 %s1274_s24, 4  ;;  %s1163_s30 = int_to_ptr.vmem [resolvable:$false] %s1162_s30 }
  0x2c   : > { %s1164_s12 = scalar_lea.vmem %s1163_s30, 128  ;;  %p1165_p11 = scmp.lt.s32.totalorder %s1415_s19, %s1163_s30 }
  0x2d   : > { %p1160_p4 = pnand %p1158_p2, %p1144_p3  ;;  %p1166_p5 = scmp.lt.s32.totalorder %s1164_s12, %s1157_s23 }
  0x2f   : > { %p1161_p12 = pneg %p1160_p4  ;;  %p1167_p8 = por %p1166_p5, %p1165_p11 }
  0x31   : > { %p1168_p9 = pnand %p1167_p8, %p1161_p12 }
  0x33   : > { %1171 = shalt.err (!%p1168_p9)
}
  0x34   : > { %1082 = dma.hbm_to_vmem [thread:$0]  (!%p1411_p13), %s1407_s13, 64, %s1415_s19, %s338_s22  }
  0x35   : > { %p1668_p0 = scmp.lt.s32.totalorder %s1272_s18, 3  ;;  %p1669_p1 = scmp.ge.s32.totalorder %s1272_s18, 1 }
  0x36   : > { %s1004_s23 = sshll.u32 %s1400_s28, 5  ;;  %s1028_s11 = sshll.u32 %s1272_s18, 9 }
  0x37   : > { %p1449_p7 = pnand %p1669_p1, %p1668_p0  ;;  %s1671_s3 = sld [smem:[#allocation15_spill]] }
  0x38   : > { %s359_s12 = scalar_lea.vmem [#allocation6], %s1004_s23  ;;  %s356_s13 = scalar_lea.sflag [#allocation7], %s1400_s28 }
  0x39   : > { %s366_s2 = sshll.u32 %s359_s12, 4  ;;  %s1460_s2 = int_to_ptr.vmem [resolvable:$true] %s366_s2 }
  0x3d   : > { %s1458_s30 = scalar_lea.hbm %s1671_s3, %s1028_s11  ;;  %s1177_s11 = scalar_lea.hbm %s1671_s3, 1024 }
  0x3e   : > { %s1172_s19 = scalar_lea.hbm %s1458_s30, 512  ;;  %p1178_p2 = scmp.lt.u32.totalorder %s1458_s30, %s1671_s3 }
  0x3f   : > { %p1173_p11 = scmp.ne.s32.totalorder %s1458_s30, %s1172_s19  ;;  %p1179_p4 = scmp.lt.u32.totalorder %s1177_s11, %s1172_s19 }
  0x40   : > { %p1181_p8 = scmp.lt.u32.totalorder %s1172_s19, %s1458_s30 }
  0x41   : > { %p1175_p12 = pnand %p1173_p11, %p1144_p3  ;;  %p1180_p5 = por %p1179_p4, %p1178_p2 }
  0x43   : > { %p1176_p10 = pneg %p1175_p12  ;;  %p1182_p9 = por %p1181_p8, %p1180_p5 }
  0x45   : > { %p1183_p0 = pnand %p1182_p9, %p1176_p10 }
  0x47   : > { %1186 = shalt.err (!%p1183_p0)
}
  0x48   : > { %s1187_s23 = scalar_lea.vmem %s1460_s2, 512  ;;  %s1275_s17 = smov [#allocation6]  }
  0x49   : > { %p1188_p1 = scmp.ne.s32.totalorder %s1460_s2, %s1187_s23  ;;  %s1192_s12 = sshll.u32 %s1275_s17, 4  ;;  %s1193_s12 = int_to_ptr.vmem [resolvable:$false] %s1192_s12 }
  0x4a   : > { %s1194_s22 = scalar_lea.vmem %s1193_s12, 1024  ;;  %p1195_p6 = scmp.lt.s32.totalorder %s1460_s2, %s1193_s12 }
  0x4b   : > { %p1190_p11 = pnand %p1188_p1, %p1144_p3  ;;  %p1196_p2 = scmp.lt.s32.totalorder %s1194_s22, %s1187_s23 }
  0x4d   : > { %p1191_p12 = pneg %p1190_p11  ;;  %p1197_p4 = por %p1196_p2, %p1195_p6 }
  0x4f   : > { %p1198_p5 = pnand %p1197_p4, %p1191_p12 }
  0x51   : > { %1201 = shalt.err (!%p1198_p5)
}
  0x52   : > { %s1276_s19 = smov 128   ;;  %s1277_s11 = smov 8  }
  0x53   : > { %1085 = dma.hbm_to_vmem [thread:$0]  (!%p1411_p13), %s1458_s30, 512, %s1460_s2, %s356_s13, %s1276_s19, %s1276_s19, %s1277_s11  }
  0x54   : > { %378 = sbr.rel (%p1449_p7) target bundleno = 961 (0x3c1), region = 60  ;;  %s1491_s14 = sand.u32 (!%p1449_p7), 1, %s1264_s16  }
  0x55   : > { %s1657_s24 = sshll.u32 (!%p1449_p7), %s1491_s14, 2  ;;  %s381_s23 = scalar_lea.sflag (!%p1449_p7), [#allocation4], %s1491_s14 }
  0x56   : > { %s1497_s17 = scalar_lea.vmem (!%p1449_p7), [#allocation3], %s1657_s24  ;;  %p1672_p6 = scmp.ne.s32.totalorder (!%p1449_p7), %s1663_s25, 0 }
  0x5b   : > { %1247 = dma.done.wait (%p1672_p6), %s381_s23, 64  }
  0x5c   : > { %1249 = vsyncadd (%p1672_p6), %s381_s23, 4294967232  ;;  %s1009_s2 = sshll.u32 %s1491_s14, 5  ;;  %s390_s28 = scalar_lea.sflag [#allocation7], %s1491_s14 }
  0x5d   : > { %s1505_s21 = scalar_lea.vmem [#allocation6], %s1009_s2 }
  0x5e   : > { %1251 = dma.done.wait (%p1672_p6), %s390_s28, 512  }
  0x5f   : > { %1253 = vsyncadd (%p1672_p6), %s390_s28, 4294966784  ;;  %p443_p13 = scmp.lt.s32.totalorder %s1362_s7, 1  ;;  %vm466_vm0 = vcmask 261120   ;;  %v455_v1 = vld [vmem:[%s1647_s4] sm:$0xff]  ;;  %v456_v2 = vld [vmem:[%s1647_s4 + $0x8] sm:$0xff]  ;;  %vm611_vm1 = vcmask 64512   ;;  %v663_v44 = vlaneseq }
  0x60   : > { %v457_v3 = vld [vmem:[%s1647_s4 + $0x10] sm:$0xff]  ;;  %v1062_v4 = vpack.c.bf16 %v456_v2, %v455_v1  ;;  %v458_v5 = vld [vmem:[%s1647_s4 + $0x18] sm:$0xff]  ;;  %v1278_v13 = vmov 0   ;;  %v1013_v14 = vld [vmem:[%s1648_s5] ss:$0 sm:$0xff]  ;;  %vm582_vm2 = vcmask 130048  }
  0x61   : > { %s444_s29 = scalar_select %p443_p13, %s1362_s7, 1  ;;  %v1066_v7 = vpack.c.bf16 %v458_v5, %v457_v3  ;;  %1130 = vset.pattern.permute.xlu1 %v1278_v13  ;;  %1131 = vset.pattern.permute.xlu0 %v1278_v13  ;;  %v1019_v19 = vld [vmem:[%s1649_s6] ss:$0 sm:$0xff]  ;;  %v702_v38 = vld [vmem:[%s1651_s8 + $0x8] sm:$0xff]  ;;  %v1279_v39 = vmov 0.0|0.0   ;;  %vm1280_vm3 = vmmov 0  }
  0x62   : > { %1063 = vmatprep.subr.bf16.mxu0 %v1062_v4  ;;  %v1020_v36 = vld [vmem:[#allocation2] ss:$0 sm:$0xff]  ;;  %1070 = vmatprep.subr.bf16.mxu1 %v1279_v39  ;;  %v1281_v41 = vmov 0.0   ;;  %v664_v48 = vand.u32 127, %v663_v44  ;;  %v1556_v49 = vshrl.u32 %v663_v44, 7  ;;  %vm681_vm4 = vcmask 1041409  }
  0x63   : > { %s1029_s30 = sshll.u32 %s444_s29, 5  ;;  %1065 = vmatpush3.bf16.msra.mxu0 %v1062_v4  ;;  %s450_s24 = scalar_lea.vmem %s1644_s1, %s444_s29  ;;  %v701_v37 = vld [vmem:[%s1651_s8] sm:$0xff]  ;;  %1059 = vmatprep.mubr.msk.f32.mxu1 %vm1280_vm3, %v1281_v41  ;;  %vm683_vm5 = vcmask 1042434   ;;  %vm685_vm7 = vcmask 1043459   ;;  %vm689_vm8 = vcmask 60416  }
  0x64   : > { %s447_s22 = scalar_lea.vmem %s1643_s0, %s1029_s30  ;;  %1067 = vmatprep.subr.bf16.mxu0 %v1066_v7  ;;  %v1535_v11 = vld [vmem:[%s450_s24] ss:$0 sm:$0xff]  ;;  %v1071_v40 = vpack.c.bf16 %v702_v38, %v701_v37  ;;  %v667_v56 = vsub.s32 %v664_v48, %v1556_v49  ;;  %s1673_s30 = sshll.u32 %s1491_s14, 2 }
  0x65   : > { %v451_v6 = vld [vmem:[%s447_s22] sm:$0xff]  ;;  %v452_v8 = vld [vmem:[%s447_s22 + $0x8] sm:$0xff]  ;;  %v453_v9 = vld [vmem:[%s447_s22 + $0x10] sm:$0xff]  ;;  %v612_v12 = vsel %vm611_vm1, %v1535_v11, 0.0  ;;  %vm658_vm6 = vcmp.eq.f32.partialorder %v1535_v11, 0.0  ;;  %s442_s3 = scalar_lea.vmem [#allocation8], %s1673_s30 }
  0x66   : > { %1049 = vmatprep.mubr.msk.f32.mxu0 %vm466_vm0, %v451_v6  ;;  %v454_v10 = vld [vmem:[%s447_s22 + $0x18] sm:$0xff]  ;;  %613 = vadd.xlane.f32.xlu0 %v612_v12  ;;  %s885_s24 = sshll.u32 %s442_s3, 4  ;;  %p1674_p7 = scmp.ne.s32.totalorder %s1664_s26, 0  ;;  %s1600_s24 = int_to_ptr.vmem [resolvable:$true] %s885_s24 }
  0x67   : > { %1069 = vmatpush3.bf16.msra.mxu0 %v1066_v7  ;;  %1072 = vmatpush3.bf16.msra.mxu1 %v1071_v40  ;;  %s1282_s29 = smov [#allocation8]  }
  0x68   : > { %s1206_s19 = sshll.u32 %s1282_s29, 4  ;;  %s1207_s19 = int_to_ptr.vmem [resolvable:$false] %s1206_s19 }
  0x69   : > { %s1208_s11 = scalar_lea.vmem %s1207_s19, 128  ;;  %p1209_p9 = scmp.lt.s32.totalorder %s1600_s24, %s1207_s19 }
  0x6a   : > { %1050 = vmatmul.mubr.msk.f32.vlgmr.msra.gmra.mrb[0].mxu0 %vm466_vm0, %v452_v8 }
  0x6b   : > { %1052 = vmatprep.mubr.msk.f32.mxu0 %vm466_vm0, %v453_v9 }
  0x6e   : > { %1053 = vmatmul.mubr.msk.f32.gmra.mrb[2].mxu0 %vm466_vm0, %v454_v10 }
  0xf3   : > { %v614_v42 = vpop.xlane.xlu0 %613 }
  0xf4   : > { %v615_v47 = vmax.f32 %v614_v42, 1.0 }
  0xf6   : > { %1132 = vrcp.f32 %v615_v47 }
 0x13d   : > { %v1051_v15 = vpop.f32.mrb[0].mxu0 }
 0x13e   : > { %v551_v16 = vadd.f32 %v1051_v15, %v1013_v14  ;;  %v545_v17 = vpop.f32.mrb[1].mxu0 }
 0x13f   : > { %v546_v18 = vadd.f32 %v1013_v14, %v545_v17 }
 0x140   : > { %v565_v20 = vmax.f32 %v551_v16, 0.0 }
 0x141   : > { %v564_v21 = vmax.f32 %v546_v18, 0.0  ;;  %v1054_v22 = vpop.f32.mrb[2].mxu0 }
 0x142   : > { %v561_v23 = vadd.f32 %v1054_v22, %v1013_v14  ;;  %v555_v24 = vpop.f32.mrb[3].mxu0  ;;  %v629_v25 = vmul.f32 %v1019_v19, %v565_v20 }
 0x143   : > { %v556_v26 = vadd.f32 %v1013_v14, %v555_v24  ;;  %v628_v29 = vmul.f32 %v1019_v19, %v564_v21 }
 0x144   : > { %v567_v27 = vmax.f32 %v561_v23, 0.0  ;;  %v635_v28 = vsel %vm582_vm2, %v629_v25, 0.0  ;;  %v1133_v25 = vpop.eup %1132 }
 0x145   : > { %v566_v30 = vmax.f32 %v556_v26, 0.0  ;;  %636 = vadd.xlane.f32.xlu0 %v635_v28  ;;  %v632_v33 = vsel %vm582_vm2, %v628_v29, 0.0 }
 0x146   : > { %v631_v31 = vmul.f32 %v1019_v19, %v567_v27 }
 0x147   : > { %v630_v34 = vmul.f32 %v1019_v19, %v566_v30 }
 0x148   : > { %v641_v32 = vsel %vm582_vm2, %v631_v31, 0.0 }
 0x149   : > { %642 = vadd.xlane.f32.xlu1 %v641_v32  ;;  %633 = vadd.xlane.f32.xlu0 %v632_v33  ;;  %v638_v35 = vsel %vm582_vm2, %v630_v34, 0.0 }
 0x14d   : > { %639 = vadd.xlane.f32.xlu1 %v638_v35 }
 0x15e   : > { %651 = vperm.xlu1 %1130, %v1020_v36  }
 0x15f   : > { %576 = vbcast.lane.b32.xlu0 %v1535_v11, 256 }
 0x1d2   : > { %v637_v43 = vpop.xlane.xlu0 %636 }
 0x1d6   : > { %v643_v45 = vpop.xlane.xlu1 %642  ;;  %v634_v46 = vpop.xlane.xlu0 %633 }
 0x1da   : > { %v640_v50 = vpop.xlane.xlu1 %639  ;;  %v577_v51 = vpop.permute.xlu0 %576 }
 0x1db   : > { %v578_v52 = vmul.f32 %v577_v51, %v564_v21  ;;  %v579_v53 = vmul.f32 %v577_v51, %v565_v20  ;;  %v580_v54 = vmul.f32 %v577_v51, %v566_v30  ;;  %v581_v55 = vmul.f32 %v577_v51, %v567_v27 }
 0x1dd   : > { %v583_v57 = vsel %vm582_vm2, %v578_v52, 0.0  ;;  %v590_v58 = vsel %vm582_vm2, %v579_v53, 0.0  ;;  %v597_v59 = vsel %vm582_vm2, %v580_v54, 0.0  ;;  %v604_v60 = vsel %vm582_vm2, %v581_v55, 0.0 }
 0x1de   : > { %v584_v61 = vrot.slane %v583_v57, 4  ;;  %v591_v62 = vrot.slane %v590_v58, 4  ;;  %v598_v63 = vrot.slane %v597_v59, 4  ;;  %v605_v0 = vrot.slane %v604_v60, 4  ;;  %v652_v1 = vpop.permute.xlu1 %651 }
 0x1df   : > { %v654_v2 = vadd.f32 %v652_v1, %v634_v46  ;;  %v655_v3 = vadd.f32 %v652_v1, %v637_v43  ;;  %v656_v4 = vadd.f32 %v652_v1, %v640_v50  ;;  %v657_v5 = vadd.f32 %v652_v1, %v643_v45  ;;  %v796_v1 = vld [vmem:[%s1505_s21 + $0x8] sm:$0xff] }
 0x1e0   : > { %v585_v6 = vadd.f32 %v584_v61, %v583_v57  ;;  %v592_v7 = vadd.f32 %v591_v62, %v590_v58  ;;  %v599_v8 = vadd.f32 %v598_v63, %v597_v59  ;;  %v606_v9 = vadd.f32 %v605_v0, %v604_v60  ;;  %v1021_v62 = vld [vmem:[%s1652_s9] ss:$0 sm:$0xff] }
 0x1e1   : > { %v668_v10 = vrot.slane %v654_v2, %v667_v56  ;;  %v672_v12 = vrot.slane %v655_v3, %v667_v56  ;;  %v676_v13 = vrot.slane %v656_v4, %v667_v56  ;;  %v680_v18 = vrot.slane %v657_v5, %v667_v56  ;;  %v795_v2 = vld [vmem:[%s1505_s21] sm:$0xff] }
 0x1e2   : > { %v586_v14 = vrot.slane %v585_v6, 2  ;;  %v593_v15 = vrot.slane %v592_v7, 2  ;;  %v600_v16 = vrot.slane %v599_v8, 2  ;;  %v607_v17 = vrot.slane %v606_v9, 2 }
 0x1e3   : > { %v682_v19 = vsel %vm681_vm4, %v672_v12, %v668_v10  ;;  %v808_v52 = vsub.s32 1, %v1556_v49  ;;  %v801_v53 = vsub.s32 0, %v1556_v49  ;;  %v815_v58 = vsub.s32 2, %v1556_v49 }
 0x1e4   : > { %v587_v20 = vadd.f32 %v586_v14, %v585_v6  ;;  %v594_v21 = vadd.f32 %v593_v15, %v592_v7  ;;  %v601_v22 = vadd.f32 %v600_v16, %v599_v8  ;;  %v608_v23 = vadd.f32 %v607_v17, %v606_v9  ;;  %v797_v7 = vld [vmem:[%s1505_s21 + $0x10] sm:$0xff]  ;;  %v798_v16 = vld [vmem:[%s1505_s21 + $0x18] sm:$0xff]  ;;  %s1025_s21 = sshll.u32 %s1362_s7, 6  ;;  %s1202_s7 = scalar_lea.vmem %s1600_s24, 64 }
 0x1e5   : > { %v684_v24 = vsel %vm683_vm5, %v676_v13, %v682_v19  ;;  %v822_v60 = vsub.s32 3, %v1556_v49  ;;  %s1598_s22 = scalar_lea.hbm %s1653_s10, %s1025_s21  ;;  %p1203_p3 = scmp.ne.s32.totalorder %s1600_s24, %s1202_s7 }
 0x1e6   : > { %v588_v26 = vrot.slane %v587_v20, 1  ;;  %v595_v27 = vrot.slane %v594_v21, 1  ;;  %v602_v28 = vrot.slane %v601_v22, 1  ;;  %v686_v29 = vsel %vm685_vm7, %v680_v18, %v684_v24  ;;  %p1210_p0 = scmp.lt.s32.totalorder %s1208_s11, %s1202_s7 }
 0x1e7   : > { %v688_v30 = vsel %vm658_vm6, -1e+09, %v686_v29  ;;  %v609_v31 = vrot.slane %v608_v23, 1  ;;  %p1204_p10 = pnand %p1203_p3, %p1674_p7 }
 0x1e8   : > { %v589_v11 = vadd.f32 %v588_v26, %v587_v20  ;;  %v596_v32 = vadd.f32 %v595_v27, %v594_v21  ;;  %v690_v33 = vsel %vm689_vm8, %v688_v30, -inf  ;;  %v603_v34 = vadd.f32 %v602_v28, %v601_v22  ;;  %p1211_p1 = por %p1210_p0, %p1209_p9 }
 0x1e9   : > { %691 = vmax.xlane.f32.xlu1 %v690_v33  ;;  %v610_v35 = vadd.f32 %v609_v31, %v608_v23  ;;  %p1205_p8 = pneg %p1204_p10 }
 0x1ea   : > { %v617_v36 = vmul.f32 %v1133_v25, %v589_v11  ;;  %v618_v37 = vmul.f32 %v1133_v25, %v596_v32  ;;  %v619_v38 = vmul.f32 %v1133_v25, %v603_v34 }
 0x1eb   : > { %v620_v39 = vmul.f32 %v1133_v25, %v610_v35  ;;  %p1212_p11 = pnand %p1211_p1, %p1205_p8 }
 0x1ec   : > { %v714_v40 = vsel %vm681_vm4, %v618_v37, %v617_v36 }
 0x1ed   : > { %v715_v41 = vsel %vm683_vm5, %v619_v38, %v714_v40 }
 0x1ee   : > { %v716_v42 = vsel %vm685_vm7, %v620_v39, %v715_v41 }
 0x1ef   : > { %1060 = vmatmul.mubr.msk.f32.vlgmr.msra.gmra.mrb[0].mxu1 %vm582_vm2, %v716_v42  ;;  %v859_v42 = vld [vmem:[%s1497_s17] sm:$0xf]  ;;  %s872_s17 = scalar_lea.sflag [#allocation5], %s1491_s14 }
 0x276   : > { %v692_v43 = vpop.xlane.xlu1 %691 }
 0x277   : > { %v693_v44 = vsub.f32 %v688_v30, %v692_v43 }
 0x279   : > { %v694_v45 = vmul.f32 1.442695, %v693_v44 }
 0x27b   : > { %1134 = vpow2.f32 %v694_v45 }
 0x285   : > { %v1135_v46 = vpop.eup %1134 }
 0x286   : > { %v696_v47 = vsel %vm689_vm8, %v1135_v46, 0.0 }
 0x287   : > { %697 = vadd.xlane.f32.xlu0 %v696_v47 }
 0x2c2   : > { %v785_v48 = vpop.f32.mrb[0].mxu1 }
 0x2c3   : > { %v1061_v50 = vpop.f32.mrb[1].mxu1  ;;  %v786_v63 = vadd.f32 %v1021_v62, %v785_v48 }
 0x2c5   : > { %v1023_v0 = vmul.f32 -1.442695, %v786_v63 }
 0x314   : > { %v698_v51 = vpop.xlane.xlu0 %697 }
 0x315   : > { %1136 = vrcp.f32 %v698_v51 }
 0x316   : > { %1138 = vpow2.f32 %v1023_v0 }
 0x31f   : > { %v1137_v54 = vpop.eup %1136 }
 0x320   : > { %v700_v55 = vmul.f32 %v1137_v54, %v1135_v46  ;;  %v1139_v22 = vpop.eup %1138 }
 0x321   : > { %v792_v28 = vadd.f32 1.0, %v1139_v22 }
 0x322   : > { %v809_v56 = vrot.slane %v700_v55, %v808_v52  ;;  %v802_v57 = vrot.slane %v700_v55, %v801_v53  ;;  %v816_v59 = vrot.slane %v700_v55, %v815_v58  ;;  %v823_v61 = vrot.slane %v700_v55, %v822_v60 }
 0x323   : > { %1140 = vrcp.f32 %v792_v28 }
 0x324   : > { %811 = vbcast.lane.b32.xlu0 %v809_v56, 256  ;;  %804 = vbcast.lane.b32.xlu1 %v802_v57, 256 }
 0x328   : > { %818 = vbcast.lane.b32.xlu1 %v816_v59, 256 }
 0x32c   : > { %825 = vbcast.lane.b32.xlu1 %v823_v61, 256 }
 0x32d   : > { %v1141_v47 = vpop.eup %1140 }
 0x396   : > { %v812_v3 = vpop.permute.xlu0 %811  ;;  %v805_v4 = vpop.permute.xlu1 %804 }
 0x397   : > { %v828_v5 = vmul.f32 %v812_v3, %v796_v1  ;;  %v827_v6 = vmul.f32 %v805_v4, %v795_v2 }
 0x399   : > { %v838_v49 = vsel %vm611_vm1, %v828_v5, 0.0  ;;  %v831_v8 = vsel %vm611_vm1, %v827_v6, 0.0 }
 0x39a   : > { %v839_v9 = vrot.slane %v838_v49, 4  ;;  %v832_v10 = vrot.slane %v831_v8, 4  ;;  %v819_v12 = vpop.permute.xlu1 %818 }
 0x39b   : > { %v829_v13 = vmul.f32 %v819_v12, %v797_v7 }
 0x39c   : > { %v840_v14 = vadd.f32 %v839_v9, %v838_v49  ;;  %v833_v15 = vadd.f32 %v832_v10, %v831_v8 }
 0x39d   : > { %v845_v17 = vsel %vm611_vm1, %v829_v13, 0.0 }
 0x39e   : > { %v841_v18 = vrot.slane %v840_v14, 2  ;;  %v834_v19 = vrot.slane %v833_v15, 2  ;;  %v846_v20 = vrot.slane %v845_v17, 4  ;;  %v826_v21 = vpop.permute.xlu1 %825 }
 0x39f   : > { %v830_v23 = vmul.f32 %v826_v21, %v798_v16 }
 0x3a0   : > { %v842_v24 = vadd.f32 %v841_v18, %v840_v14  ;;  %v835_v25 = vadd.f32 %v834_v19, %v833_v15  ;;  %v847_v26 = vadd.f32 %v846_v20, %v845_v17 }
 0x3a1   : > { %v852_v27 = vsel %vm611_vm1, %v830_v23, 0.0 }
 0x3a2   : > { %v848_v29 = vrot.slane %v847_v26, 2  ;;  %v853_v30 = vrot.slane %v852_v27, 4  ;;  %v843_v31 = vrot.slane %v842_v24, 1  ;;  %v836_v11 = vrot.slane %v835_v25, 1 }
 0x3a4   : > { %v849_v32 = vadd.f32 %v848_v29, %v847_v26  ;;  %v854_v33 = vadd.f32 %v853_v30, %v852_v27  ;;  %v844_v36 = vadd.f32 %v843_v31, %v842_v24  ;;  %v837_v37 = vadd.f32 %v836_v11, %v835_v25 }
 0x3a6   : > { %v850_v34 = vrot.slane %v849_v32, 1  ;;  %v855_v35 = vrot.slane %v854_v33, 2  ;;  %v864_v41 = vsel %vm681_vm4, %v844_v36, %v837_v37 }
 0x3a8   : > { %v856_v38 = vadd.f32 %v855_v35, %v854_v33  ;;  %v851_v39 = vadd.f32 %v850_v34, %v849_v32 }
 0x3aa   : > { %v857_v40 = vrot.slane %v856_v38, 1  ;;  %v865_v44 = vsel %vm683_vm5, %v851_v39, %v864_v41 }
 0x3ac   : > { %v858_v43 = vadd.f32 %v857_v40, %v856_v38 }
 0x3ae   : > { %v866_v45 = vsel %vm685_vm7, %v858_v43, %v865_v44 }
 0x3af   : > { %v868_v46 = vmul.f32 %v866_v45, %v859_v42 }
 0x3b1   : > { %v869_v48 = vmul.f32 %v1141_v47, %v868_v46 }
 0x3b3   : > { %870 = vst.msk [vmem:[%s442_s3] sm:$0xf] %vm689_vm8, %v869_v48 }
 0x3b4   : > { %1215 = shalt.err (!%p1212_p11)
}
 0x3b5   : > { %s1216_s14 = scalar_lea.hbm %s1598_s22, 64  ;;  %s1220_s25 = scalar_lea.hbm %s1653_s10, 128 }
 0x3b6   : > { %p1217_p12 = scmp.ne.s32.totalorder %s1598_s22, %s1216_s14  ;;  %p1221_p5 = scmp.lt.u32.totalorder %s1598_s22, %s1653_s10 }
 0x3b7   : > { %p1222_p6 = scmp.lt.u32.totalorder %s1220_s25, %s1216_s14  ;;  %p1224_p3 = scmp.lt.u32.totalorder %s1216_s14, %s1598_s22 }
 0x3b8   : > { %p1218_p2 = pnand %p1217_p12, %p1674_p7 }
 0x3b9   : > { %p1223_p13 = por %p1222_p6, %p1221_p5 }
 0x3ba   : > { %p1219_p4 = pneg %p1218_p2 }
 0x3bb   : > { %p1225_p10 = por %p1224_p3, %p1223_p13 }
 0x3bd   : > { %p1226_p8 = pnand %p1225_p10, %p1219_p4 }
 0x3bf   : > { %1229 = shalt.err (!%p1226_p8)
}
 0x3c0   : > { %1077 = dma.vmem_to_hbm [thread:$0]  (%p1674_p7), %s1600_s24, 64, %s1598_s22, %s872_s17  }
 0x3c1 PF: > { %s897_s30 = sand.u32 1, %s1260_s15   ;;  %p1675_p9 = scmp.ne.s32.totalorder %s1665_s27, 0 }
 0x3c2   : > { %p1676_p0 = scmp.ge.s32.totalorder %s1272_s18, 2  ;;  %s898_s3 = scalar_lea.sflag [#allocation5], %s897_s30 }
 0x3c4   : > { %p1087_p1 = pnand %p1676_p0, %p1675_p9 }
 0x3c6   : > { %1255 = dma.done.wait (!%p1087_p1), %s898_s3, 64  }
 0x3c7   : > { %1257 = vsyncadd (!%p1087_p1), %s898_s3, 4294967232  ;;  %s1677_s13 = sld [smem:[#allocation12_spill]]  ;;  %s1678_s17 = sld [smem:[#allocation13_spill]] }
 0x3c8   : > { %p28_p11 = scmp.ge.s32.totalorder %s1366_s20, 4   ;;  %s1679_s15 = smov %s1264_s16 }
 0x3c9   : > { %s1681_s18 = smov %s1366_s20 }
 0x3ca   :  { %30 = sbr.rel (!%p28_p11) target bundleno = 10 (0xa), region = 124 }
 0x3cd   : > { %s1680_s16 = smov %s1677_s13 }
 0x3d1   :  { %903 = vsyncpa [#allocation4], 1 }
 0x3d2   :  { %905 = vsyncpa [#allocation4 + $0x1], 1 }
 0x3d3   :  { %906 = vsyncpa [#allocation7], 1 }
 0x3d4   :  { %908 = vsyncpa [#allocation7 + $0x1], 1 }
 0x3d5   :  { %909 = vsyncpa [#allocation5], 1 }
 0x3d6   :  { %911 = vsyncpa [#allocation5 + $0x1], 1 }

</bundles_post_ra>
